<compile_context>
chip_gen: v7x
topology: tpu7x:2x2x1
jax: 0.10.0
libtpu: 0.0.40
codegen_flags: <defaults>
</compile_context>

<pallas_src>
import functools

import jax
import jax.numpy as jnp
from jax.experimental import pallas as pl
from jax.experimental.pallas import tpu as pltpu

_EPS = 1e-5  # torch.nn.LayerNorm default eps


def _finish_logit(s1, s2, s3, c, g, d):
    """Per-row scalar tail: fold moments into the halting logit."""
    inv_d = 1.0 / float(d)
    mean = s1 * inv_d
    var = s2 * inv_d - mean * mean
    var = jnp.maximum(var, 0.0)          # guard E[x^2]-mean^2 cancellation
    rstd = jax.lax.rsqrt(var + _EPS)
    return (s3 - mean * g) * rstd + c


def _halting_kernel_mxu(x_ref, w128_ref, sc_ref, o_ref, *, d):
    # x_ref: (TILE_R, D) VMEM.  w128_ref: (D, 128) VMEM, col0 = ones,
    # col1 = gamma*w.  sc_ref: (2,) SMEM = [c, G].  o_ref: (TILE_R, 1).
    x = x_ref[...].astype(jnp.float32)
    # One MXU matmul yields S1 (col 0) and S3 (col 1); MXU is otherwise idle.
    m = jnp.dot(x, w128_ref[...],
                preferred_element_type=jnp.float32,
                precision=jax.lax.Precision.HIGHEST)
    s1 = m[:, 0:1]
    s3 = m[:, 1:2]
    # Only the squared-sum reduce stays on VPU mul + XLU lane-reduce.
    s2 = jnp.sum(x * x, axis=-1, keepdims=True)
    logit = _finish_logit(s1, s2, s3, sc_ref[0], sc_ref[1], d)
    o_ref[...] = jax.nn.sigmoid(logit).astype(o_ref.dtype)


def _halting_kernel_vpu(x_ref, gw_ref, sc_ref, o_ref, *, d):
    # Small-D path (MXU 128-wide result would be >input-sized for tiny D).
    # x_ref: (TILE_R, D) VMEM.  gw_ref: (1, D) VMEM = gamma*w.
    x = x_ref[...].astype(jnp.float32)
    gw = gw_ref[...]
    s1 = jnp.sum(x, axis=-1, keepdims=True)
    s2 = jnp.sum(x * x, axis=-1, keepdims=True)
    s3 = jnp.sum(x * gw, axis=-1, keepdims=True)
    logit = _finish_logit(s1, s2, s3, sc_ref[0], sc_ref[1], d)
    o_ref[...] = jax.nn.sigmoid(logit).astype(o_ref.dtype)


def _vmem_capacity_bytes():
    """Physical VMEM per TensorCore; conservative fallback if query fails."""
    try:
        cap = int(pltpu.get_tpu_info().vmem_capacity_bytes)
        if cap > 0:
            return cap
    except Exception:
        pass
    return 64 * 1024 * 1024  # v7x per-TC size: safe lower bound everywhere


def _choose_tile_rows(R, D, itemsize, requested, vmem_cap):
    # Input double-buffer budget: ~50% of physical VMEM (limit is set to 75%,
    # leaving room for the matmul intermediate, outputs and Mosaic scratch).
    budget = vmem_cap // 2
    cap = max(8, (budget // (2 * D * itemsize)) // 8 * 8)
    tile_r = min(int(requested), int(cap))
    # Don't make the block (much) larger than the array itself.
    tile_r = min(tile_r, ((R + 7) // 8) * 8)
    # Guarantee >= 2 grid steps when possible: both v7x TensorCores get work
    # (dimension_semantics=("parallel",)) and the DMA pipeline can overlap.
    if R > 8:
        half = (((R + 1) // 2 + 7) // 8) * 8
        tile_r = min(tile_r, max(8, half))
    return max(8, (tile_r // 8) * 8)


def halting_unit(x, gamma, beta, w, b, *, tile_rows=4096, use_mxu=None):
    """x: (..., D). Returns sigmoid(Linear(LayerNorm(x))) -> (..., 1)."""
    orig_shape = x.shape
    D = orig_shape[-1]
    x2 = x.reshape(-1, D)          # free reshape, no data movement
    R = x2.shape[0]

    # Fold LayerNorm affine + head:
    #   w.(g*xn + beta) + b = xn.(g*w) + (beta.w + b)
    gamma_f = gamma.astype(jnp.float32).reshape(-1)
    beta_f = beta.astype(jnp.float32).reshape(-1)
    w_f = w.astype(jnp.float32).reshape(-1)
    gw = gamma_f * w_f                                           # (D,)
    c = jnp.sum(beta_f * w_f) + jnp.sum(b.astype(jnp.float32))   # scalar
    g = jnp.sum(gw)                                              # scalar
    scalars = jnp.stack([c, g])                                  # (2,) -> SMEM

    if use_mxu is None:
        use_mxu = D >= 128   # below 128 lanes the MXU result would dominate

    vmem_cap = _vmem_capacity_bytes()
    itemsize = jnp.dtype(x2.dtype).itemsize
    tile_r = _choose_tile_rows(R, D, itemsize, tile_rows, vmem_cap)
    grid = (pl.cdiv(R, tile_r),)   # partial last block; no pad copy of x

    if use_mxu:
        # (D, 128) constant: col 0 = ones (-> S1), col 1 = gamma*w (-> S3).
        w_operand = (jnp.zeros((D, 128), jnp.float32)
                     .at[:, 0].set(1.0)
                     .at[:, 1].set(gw))
        w_spec = pl.BlockSpec((D, 128), lambda i: (0, 0))
        kernel = functools.partial(_halting_kernel_mxu, d=D)
    else:
        w_operand = gw.reshape(1, D)
        w_spec = pl.BlockSpec((1, D), lambda i: (0, 0))
        kernel = functools.partial(_halting_kernel_vpu, d=D)

    out = pl.pallas_call(
        kernel,
        out_shape=jax.ShapeDtypeStruct((R, 1), x.dtype),
        grid_spec=pltpu.PrefetchScalarGridSpec(
            num_scalar_prefetch=0,
            grid=grid,
            in_specs=[
                pl.BlockSpec((tile_r, D), lambda i: (i, 0)),        # x tile
                w_spec,                                             # weights
                pl.BlockSpec(memory_space=pltpu.MemorySpace.SMEM),  # [c, G]
            ],
            out_specs=pl.BlockSpec((tile_r, 1), lambda i: (i, 0)),
        ),
        compiler_params=pltpu.CompilerParams(
            dimension_semantics=("parallel",),
            vmem_limit_bytes=int(vmem_cap) * 3 // 4,   # 48 MiB v7x / 96 MiB v5e-v6e
        ),
    )(x2, w_operand, scalars)

    return out.reshape(orig_shape[:-1] + (1,))


def reference(x, gamma, beta, w, b):
    xf = x.astype(jnp.float32)
    mean = jnp.mean(xf, axis=-1, keepdims=True)
    var = jnp.mean((xf - mean) ** 2, axis=-1, keepdims=True)
    xn = (xf - mean) / jnp.sqrt(var + _EPS)
    y = xn * gamma + beta
    logit = jnp.sum(y * w, axis=-1, keepdims=True) + b
    return jax.nn.sigmoid(logit).astype(x.dtype)


if __name__ == "__main__":
    key = jax.random.PRNGKey(0)

    def run_case(case_key, B, S, D, use_mxu):
        kx, kg, kb, kw = jax.random.split(case_key, 4)
        x = jax.random.normal(kx, (B, S, D), dtype=jnp.float32)
        # Parameters (deterministic, synthetic). PyTorch defaults are
        # gamma=1 / beta=0; perturb slightly so the folded affine is tested.
        gamma = 1.0 + 0.1 * jax.random.normal(kg, (D,), jnp.float32)
        beta = 0.1 * jax.random.normal(kb, (D,), jnp.float32)
        bound = 1.0 / (D ** 0.5)
        w = jax.random.uniform(kw, (D,), jnp.float32, minval=-bound, maxval=bound)
        b = jnp.full((1,), 1.0, jnp.float32)   # halting_bias_init = 1.0

        out = jax.block_until_ready(
            halting_unit(x, gamma, beta, w, b, use_mxu=use_mxu))
        ref = reference(x, gamma, beta, w, b)
        assert out.shape == (B, S, 1), out.shape
        err = jnp.max(jnp.abs(out - ref))
        assert jnp.allclose(out, ref, atol=1e-5, rtol=1e-5), f"max err {err}"

    k1, k2 = jax.random.split(key)
    run_case(k1, 2, 8, 32, use_mxu=False)    # small-D VPU reduction path
    run_case(k2, 2, 8, 128, use_mxu=True)    # MXU (S1/S3 via matmul) path

    print("KERNEL_OK")
</pallas_src>

<mosaic_0001>
module attributes {stable_mosaic.version = 11 : i64} {
  func.func @_halting_kernel_vpu(%arg0: i32, %arg1: memref<8x32xf32, #tpu.memory_space<vmem>>, %arg2: memref<1x32xf32, #tpu.memory_space<vmem>>, %arg3: memref<2xf32, #tpu.memory_space<smem>>, %arg4: memref<8x1xf32, #tpu.memory_space<vmem>>) attributes {dimension_semantics = [#tpu.dimension_semantics<parallel>], iteration_bounds = array<i64: 2>, scalar_prefetch = 0 : i64, scratch_operands = 0 : i64, tpu.core_type = #tpu.core_type<tc>, window_params = [{transform_indices = @transform_0, window_bounds = array<i64: 8, 32>}, {pipeline_mode = #tpu.pipeline_mode<synchronous>, transform_indices = @transform_1, window_bounds = array<i64: 1, 32>}, {transform_indices = @transform_2, window_bounds = array<i64: 2>}, {transform_indices = @transform_3, window_bounds = array<i64: 8, 1>}]} {
    %c0 = arith.constant 0 : index
    %c0_0 = arith.constant 0 : index
    %0 = vector.load %arg1[%c0, %c0_0] : memref<8x32xf32, #tpu.memory_space<vmem>>, vector<8x32xf32>
    %c0_1 = arith.constant 0 : index
    %c0_2 = arith.constant 0 : index
    %1 = vector.load %arg2[%c0_1, %c0_2] : memref<1x32xf32, #tpu.memory_space<vmem>>, vector<1x32xf32>
    %cst = arith.constant dense<0.000000e+00> : vector<8xf32>
    %2 = vector.multi_reduction <add>, %0, %cst [1] : vector<8x32xf32> to vector<8xf32>
    %3 = vector.shape_cast %2 : vector<8xf32> to vector<8x1xf32>
    %4 = arith.mulf %0, %0 : vector<8x32xf32>
    %cst_3 = arith.constant dense<0.000000e+00> : vector<8xf32>
    %5 = vector.multi_reduction <add>, %4, %cst_3 [1] : vector<8x32xf32> to vector<8xf32>
    %6 = vector.shape_cast %5 : vector<8xf32> to vector<8x1xf32>
    %7 = vector.broadcast %1 : vector<1x32xf32> to vector<8x32xf32>
    %8 = arith.mulf %0, %7 : vector<8x32xf32>
    %cst_4 = arith.constant dense<0.000000e+00> : vector<8xf32>
    %9 = vector.multi_reduction <add>, %8, %cst_4 [1] : vector<8x32xf32> to vector<8xf32>
    %10 = vector.shape_cast %9 : vector<8xf32> to vector<8x1xf32>
    %c0_5 = arith.constant 0 : index
    %11 = memref.load %arg3[%c0_5] : memref<2xf32, #tpu.memory_space<smem>>
    %c1 = arith.constant 1 : index
    %12 = memref.load %arg3[%c1] : memref<2xf32, #tpu.memory_space<smem>>
    %cst_6 = arith.constant 3.125000e-02 : f32
    %13 = vector.broadcast %cst_6 : f32 to vector<8x1xf32>
    %14 = arith.mulf %3, %13 : vector<8x1xf32>
    %cst_7 = arith.constant 3.125000e-02 : f32
    %15 = vector.broadcast %cst_7 : f32 to vector<8x1xf32>
    %16 = arith.mulf %6, %15 : vector<8x1xf32>
    %17 = arith.mulf %14, %14 : vector<8x1xf32>
    %18 = arith.subf %16, %17 : vector<8x1xf32>
    %cst_8 = arith.constant 0.000000e+00 : f32
    %19 = vector.broadcast %cst_8 : f32 to vector<8x1xf32>
    %20 = arith.maximumf %18, %19 : vector<8x1xf32>
    %cst_9 = arith.constant 9.99999974E-6 : f32
    %21 = vector.broadcast %cst_9 : f32 to vector<8x1xf32>
    %22 = arith.addf %20, %21 : vector<8x1xf32>
    %23 = math.rsqrt %22 : vector<8x1xf32>
    %24 = vector.broadcast %12 : f32 to vector<8x1xf32>
    %25 = arith.mulf %14, %24 : vector<8x1xf32>
    %26 = arith.subf %10, %25 : vector<8x1xf32>
    %27 = arith.mulf %26, %23 : vector<8x1xf32>
    %28 = vector.broadcast %11 : f32 to vector<8x1xf32>
    %29 = arith.addf %27, %28 : vector<8x1xf32>
    %30 = arith.negf %29 : vector<8x1xf32>
    %31 = math.exp %30 : vector<8x1xf32>
    %cst_10 = arith.constant 1.000000e+00 : f32
    %32 = vector.broadcast %cst_10 : f32 to vector<8x1xf32>
    %33 = arith.addf %32, %31 : vector<8x1xf32>
    %34 = arith.divf %32, %33 : vector<8x1xf32>
    %c0_11 = arith.constant 0 : index
    %c0_12 = arith.constant 0 : index
    %35 = vector.load %arg4[%c0_11, %c0_12] : memref<8x1xf32, #tpu.memory_space<vmem>>, vector<8x1xf32>
    tpu.vector_store %arg4[%c0_11, %c0_12], %34 {strides = array<i32>} : memref<8x1xf32, #tpu.memory_space<vmem>>, vector<8x1xf32>,
    return
  }
  func.func @transform_0(%arg0: i32) -> (i32, i32) {
    %c0_i32 = arith.constant 0 : i32
    %c0_i32_0 = arith.constant 0 : i32
    return %arg0, %c0_i32 : i32, i32
  }
  func.func @transform_1(%arg0: i32) -> (i32, i32) {
    %c0_i32 = arith.constant 0 : i32
    %c0_i32_0 = arith.constant 0 : i32
    %c0_i32_1 = arith.constant 0 : i32
    return %c0_i32, %c0_i32_0 : i32, i32
  }
  func.func @transform_2(%arg0: i32) -> i32 {
    %c0_i32 = arith.constant 0 : i32
    %c0_i32_0 = arith.constant 0 : i32
    return %c0_i32 : i32
  }
  func.func @transform_3(%arg0: i32) -> (i32, i32) {
    %c0_i32 = arith.constant 0 : i32
    %c0_i32_0 = arith.constant 0 : i32
    return %arg0, %c0_i32 : i32, i32
  }
}

</mosaic_0001>

<bundles_post_ra>
// kernel: tpu_custom_call.1
= control target key start
LH: loop header
LB: loop body
LE: loop exit
PB: predicated region body
PF: predicated region fallthrough
CT: control target
= control target key end

     0   :  { %8 = vsyncpa [#allocation3], 0  ;;  %s640_s0 = inlined_call_operand.hbm [shape: f32[16,32], index: 0, kind: input, shape index: {}]   ;;  %s641_s1 = inlined_call_operand.vmem [shape: f32[1,32], index: 1, kind: input, shape index: {}]   ;;  %s642_s2 = inlined_call_operand.vmem [shape: f32[2], index: 2, kind: input, shape index: {}]   ;;  %s643_s3 = inlined_call_operand.vmem [shape: f32[16,1], index: 3, kind: output, shape index: {}]  }
   0x1   :  { %10 = vsyncpa [#allocation3 + $0x1], 0 }
   0x2   :  { %11 = vsyncpa [#allocation4], 0  ;;  %s498_s12 = smov 0   ;;  %s500_s13 = smov 0  }
   0x3   :  { %s502_s14 = smov 0   ;;  %s504_s15 = smov 0  }
   0x4 LB: > { %s517_s16 = sadd.s32 4294967295, %s474_s15   ;;  %p37_p0 = scmp.ne.s32.totalorder %s466_s13, %s462_s12  ;;  %s474_s15 = sphi %s504_s15, %s657_s15   ;;  %s470_s14 = sphi %s502_s14, %s656_s14   ;;  %s466_s13 = sphi %s500_s13, %s655_s13   ;;  %s462_s12 = sphi %s498_s12, %s654_s12  }
   0x5   : > { %p644_p1 = scmp.eq.s32.totalorder %s517_s16, 0  ;;  %p321_p2 = scmp.ge.s32.totalorder %s474_s15, 1 }
   0x6   : > { %p116_p3 = scmp.lt.s32.totalorder %s474_s15, 3  ;;  %s132_s20 = sshll.u32 %s642_s2, 4  ;;  %s133_s20 = int_to_ptr.vmem [resolvable:$true] %s132_s20 }
   0x7   : > { %p525_p4 = por %p644_p1, %p37_p0  ;;  %s539_s22 = sadd.s32 1, %s474_s15  }
   0x8   : > { %p532_p5 = pnand %p321_p2, %p116_p3  ;;  %s21_s24 = ssub.s32 %s474_s15, %s539_s22 }
   0x9   : > { %s646_s17 = scalar_select %p525_p4, 1, 0 }
   0xa   : > { %p341_p6 = pneg %p532_p5  ;;  %p549_p8 = scmp.eq.s32.totalorder %s21_s24, 0 }
   0xb   : > { %s24_s26 = sadd.s32 1, %s470_s14  ;;  %p31_p9 = scmp.ne.s32.totalorder %s470_s14, %s466_s13 }
   0xc   : > { %p543_p7 = pnand %p341_p6, %p644_p1  ;;  %s391_s27 = scalar_lea.vmem %s133_s20, 16 }
   0xd   : > { %p392_p10 = scmp.ne.s32.totalorder %s133_s20, %s391_s27  ;;  %p399_p0 = scmp.lt.s32.totalorder %s133_s20, %s133_s20 }
   0xe   : > { %p393_p11 = pneg %p543_p7  ;;  %p400_p2 = scmp.lt.s32.totalorder %s391_s27, %s391_s27 }
  0x10   : > { %p394_p12 = pnand %p393_p11, %p392_p10  ;;  %p401_p3 = por %p400_p2, %p399_p0 }
  0x12   : > { %p395_p13 = pneg %p394_p12 }
  0x14   : > { %p402_p6 = pnand %p401_p3, %p395_p13 }
  0x16   : > { %405 = shalt.err (!%p402_p6)
}
  0x17   : > { %s476_s28 = smov [#allocation5]   ;;  %p32_p10 = scmp.eq.s32.totalorder %s474_s15, 0 }
  0x18   : > { %344 = dma.vmem_to_smem (!%p543_p7), %s133_s20, 16, %s476_s28, [#allocation4]  }
  0x19   : > { %s563_s29 = scalar_select %p549_p8, %s470_s14, %s24_s26  }
  0x1a   : > { %p350_p11 = scmp.lt.s32.totalorder %s474_s15, 2  ;;  %s143_s30 = sand.u32 1, %s470_s14  }
  0x1b   : > { %s325_s4 = sshll.u32 %s474_s15, 7  ;;  %p33_p12 = por %p32_p10, %p31_p9 }
  0x1c   : > { %s324_s5 = sshll.u32 %s143_s30, 3  ;;  %s575_s8 = scalar_lea.hbm %s640_s0, %s325_s4 }
  0x1d   : > { %p577_p7 = pnand %p350_p11, %p33_p12  ;;  %s147_s10 = scalar_lea.vmem [#allocation2], %s324_s5 }
  0x1e   : > { %s154_s11 = sshll.u32 %s147_s10, 4  ;;  %s144_s12 = scalar_lea.sflag [#allocation3], %s143_s30  ;;  %s581_s11 = int_to_ptr.vmem [resolvable:$true] %s154_s11 }
  0x1f   : > { %s406_s15 = scalar_lea.hbm %s575_s8, 128  ;;  %p408_p9 = pneg %p577_p7 }
  0x20   : > { %p407_p8 = scmp.ne.s32.totalorder %s575_s8, %s406_s15  ;;  %s411_s20 = scalar_lea.hbm %s640_s0, 256 }
  0x21   : > { %p412_p2 = scmp.lt.u32.totalorder %s575_s8, %s640_s0  ;;  %p413_p3 = scmp.lt.u32.totalorder %s411_s20, %s406_s15 }
  0x22   : > { %p409_p13 = pnand %p408_p9, %p407_p8  ;;  %p415_p10 = scmp.lt.u32.totalorder %s406_s15, %s575_s8 }
  0x23   : > { %p414_p6 = por %p413_p3, %p412_p2 }
  0x24   : > { %p410_p0 = pneg %p409_p13 }
  0x25   : > { %p416_p11 = por %p415_p10, %p414_p6 }
  0x27   : > { %p417_p12 = pnand %p416_p11, %p410_p0 }
  0x29   : > { %420 = shalt.err (!%p417_p12)
}
  0x2a   : > { %s421_s25 = scalar_lea.vmem %s581_s11, 128  ;;  %s477_s26 = smov [#allocation2]  }
  0x2b   : > { %p422_p8 = scmp.ne.s32.totalorder %s581_s11, %s421_s25  ;;  %s426_s27 = sshll.u32 %s477_s26, 4  ;;  %s427_s27 = int_to_ptr.vmem [resolvable:$false] %s426_s27 }
  0x2c   : > { %s428_s28 = scalar_lea.vmem %s427_s27, 256  ;;  %p429_p4 = scmp.lt.s32.totalorder %s581_s11, %s427_s27 }
  0x2d   : > { %p424_p13 = pnand %p422_p8, %p408_p9  ;;  %p430_p2 = scmp.lt.s32.totalorder %s428_s28, %s421_s25 }
  0x2f   : > { %p425_p1 = pneg %p424_p13  ;;  %p431_p3 = por %p430_p2, %p429_p4 }
  0x31   : > { %p432_p6 = pnand %p431_p3, %p425_p1 }
  0x33   : > { %435 = shalt.err (!%p432_p6)
}
  0x34   : > { %348 = dma.hbm_to_vmem [thread:$0]  (!%p577_p7), %s575_s8, 128, %s581_s11, %s144_s12  }
  0x35   : > { %163 = sbr.rel (%p532_p5) target bundleno = 265 (0x109), region = 32  ;;  %s165_s30 = sand.u32 (!%p532_p5), 1, %s466_s13  }
  0x36   : > { %s327_s4 = sshll.u32 (!%p532_p5), %s165_s30, 3  ;;  %s166_s5 = scalar_lea.sflag (!%p532_p5), [#allocation3], %s165_s30 }
  0x37   : > { %s169_s6 = scalar_lea.vmem (!%p532_p5), [#allocation2], %s327_s4  ;;  %p651_p9 = scmp.ne.s32.totalorder (!%p532_p5), %s646_s17, 0 }
  0x3c   : > { %453 = dma.done.wait (%p651_p9), %s166_s5, 128  }
  0x3d   : > { %455 = vsyncadd (%p651_p9), %s166_s5, 4294967168  ;;  %p652_p1 = scmp.eq.s32.totalorder %s517_s16, 0 }
  0x3f   : > { %457 = dma.done.wait (%p652_p1), [#allocation4], 16   ;;  %p653_p4 = pmov %p652_p1 }
  0x41   : > { %459 = vsyncadd (%p653_p4), [#allocation4], 4294967280 }
  0x42   : > { %178 = sfence }
  0x43   : > { %v200_v0 = vld [vmem:[%s169_s6] sm:$0xff]  ;;  %vm202_vm0 = vcmask 261120   ;;  %v330_v1 = vld [vmem:[%s641_s1] ss:$0 sm:$0xff]  ;;  %s331_s17 = sld [smem:[#allocation5 + $0x1]]  ;;  %s220_s8 = sld [smem:[#allocation5]] }
  0x44   : > { %v203_v2 = vsel %vm202_vm0, %v200_v0, 0.0  ;;  %v216_v3 = vmul.f32 %v330_v1, %v200_v0  ;;  %v206_v4 = vmul.f32 %v200_v0, %v200_v0  ;;  %p196_p5 = scmp.lt.s32.totalorder %s517_s16, 1  ;;  %vm241_vm1 = vcmask 7168  }
  0x45   : > { %204 = vadd.xlane.f32.xlu0 %v203_v2 }
  0x46   : > { %v217_v5 = vsel %vm202_vm0, %v216_v3, 0.0  ;;  %v207_v6 = vsel %vm202_vm0, %v206_v4, 0.0  ;;  %s659_s16 = smov (!%p196_p5, %s517_s16), 1 }
  0x47   : > { %218 = vadd.xlane.f32.xlu1 %v217_v5  ;;  %s329_s9 = sshll.u32 %s659_s16, 3 }
  0x48   : > { %s199_s12 = scalar_lea.vmem %s643_s3, %s329_s9 }
  0x49   : > { %208 = vadd.xlane.f32.xlu0 %v207_v6  ;;  %v229_v15 = vstv %s331_s17  ;;  %v233_v20 = vstv %s220_s8 }
  0xd2   : > { %v205_v7 = vpop.xlane.xlu0 %204 }
  0xd3   : > { %v222_v8 = vmul.f32 0.03125, %v205_v7 }
  0xd4   : > { %v219_v17 = vpop.xlane.xlu1 %218 }
  0xd5   : > { %v224_v10 = vmul.f32 %v222_v8, %v222_v8  ;;  %v230_v16 = vmul.f32 %v229_v15, %v222_v8 }
  0xd6   : > { %v209_v9 = vpop.xlane.xlu0 %208 }
  0xd7   : > { %v223_v11 = vmul.f32 0.03125, %v209_v9  ;;  %v231_v18 = vsub.f32 %v219_v17, %v230_v16 }
  0xd9   : > { %v225_v12 = vsub.f32 %v223_v11, %v224_v10 }
  0xdb   : > { %v226_v13 = vmax.f32 %v225_v12, 0.0 }
  0xdd   : > { %v227_v14 = vadd.f32 1e-05, %v226_v13 }
  0xdf   : > { %385 = vrsqrt.f32 %v227_v14 }
  0xe9   : > { %v386_v19 = vpop.eup %385 }
  0xea   : > { %v232_v21 = vmul.f32 %v386_v19, %v231_v18 }
  0xec   : > { %v234_v22 = vadd.f32 %v233_v20, %v232_v21 }
  0xee   : > { %v332_v23 = vmul.f32 -1.442695, %v234_v22 }
  0xf0   : > { %387 = vpow2.f32 %v332_v23 }
  0xfa   : > { %v388_v24 = vpop.eup %387 }
  0xfb   : > { %v238_v25 = vadd.f32 1.0, %v388_v24 }
  0xfd   : > { %389 = vrcp.f32 %v238_v25 }
 0x107   : > { %v390_v26 = vpop.eup %389 }
 0x108   : > { %242 = vst.msk [vmem:[%s199_s12] sm:$0xff] %vm241_vm1, %v390_v26 }
 0x109 PF: > { %p14_p7 = scmp.ge.s32.totalorder %s539_s22, 4   ;;  %s654_s12 = smov %s466_s13 }
 0x10a   : > { %s655_s13 = smov %s470_s14  ;;  %s656_s14 = smov %s563_s29 }
 0x10b   : > { %s657_s15 = smov %s539_s22  ;;  %16 = sbr.rel (!%p14_p7) target bundleno = 4 (0x4), region = 77 }
 0x112   :  { %262 = vsyncpa [#allocation3], 1 }
 0x113   :  { %264 = vsyncpa [#allocation3 + $0x1], 1 }
 0x114   :  { %265 = vsyncpa [#allocation4], 1 }
 0x115   :  { %267 = vsyncpa [#allocation4 + $0x1], 1 }

</bundles_post_ra>
